<compile_context>
chip_gen: v7x
topology: tpu7x:2x2x1
jax: 0.10.0
libtpu: 0.0.40
codegen_flags: <defaults>
</compile_context>

<pallas_src>
import functools

import jax
import jax.numpy as jnp
from jax.experimental import pallas as pl
from jax.experimental.pallas import tpu as pltpu

IN_DIM = 784          # 1 * 28 * 28
HID = 200
HID_PAD = 256         # lane-dense padded hidden width (multiple of 128)
OUT = 1
P_DROP = 0.2
KEEP_SCALE = 1.0 / (1.0 - P_DROP)
NEG_SLOPE = 0.01
# keep element iff uint32 bits >= threshold  =>  P(keep) = 1 - P_DROP
_DROP_THRESHOLD_U32 = int(P_DROP * (1 << 32))   # 858993459


def _mlp_body(x_ref, w1_ref, b1_ref, w2_ref, b2_ref, rbits_ref, o_ref):
    # Layer 1 on the MXU: bf16 operands, f32 accumulation. (TB,784)@(784,256)
    h = jnp.dot(x_ref[...], w1_ref[...], preferred_element_type=jnp.float32)
    h = h + b1_ref[...]                       # (1, 256) f32 bias row
    # LeakyReLU(0.01) on the VPU.
    h = jnp.where(h > 0, h, NEG_SLOPE * h)
    if rbits_ref is not None:
        # Inverted dropout: integer-threshold compare on raw uint32 bits,
        # single fused select + scale.
        keep = rbits_ref[...] >= jnp.uint32(_DROP_THRESHOLD_U32)
        h = jnp.where(keep, h * KEEP_SCALE, 0.0)
    # Layer 2 (padded 256 -> 1): VPU broadcast-mul + cross-lane reduction
    # instead of a degenerate N=1 MXU matmul.  Scalar bias from SMEM.
    o_ref[...] = jnp.sum(h * w2_ref[...], axis=-1, keepdims=True) + b2_ref[0]


def _disc_eval_kernel(x_ref, w1_ref, b1_ref, w2_ref, b2_ref, o_ref):
    _mlp_body(x_ref, w1_ref, b1_ref, w2_ref, b2_ref, None, o_ref)


def _disc_train_kernel(x_ref, w1_ref, b1_ref, w2_ref, b2_ref, rbits_ref, o_ref):
    _mlp_body(x_ref, w1_ref, b1_ref, w2_ref, b2_ref, rbits_ref, o_ref)


@functools.partial(jax.jit, static_argnames=("training", "block_batch"))
def discriminator_forward(imgs, w1, b1, w2, b2, rng_key, training=False,
                          block_batch=512):
    B = imgs.shape[0]
    # imgs.view(B, -1): row-major flatten; matmul operands cast to bf16.
    x = imgs.reshape(B, -1).astype(jnp.bfloat16)

    # Zero-pad the hidden dimension to 256 lanes (padded lanes stay exact 0
    # through LeakyReLU / dropout and contribute 0 to layer 2).
    w1p = jnp.zeros((IN_DIM, HID_PAD), jnp.bfloat16).at[:, :HID].set(
        w1.astype(jnp.bfloat16))
    b1p = jnp.zeros((1, HID_PAD), jnp.float32).at[0, :HID].set(
        b1.astype(jnp.float32))
    w2p = jnp.zeros((1, HID_PAD), jnp.float32).at[0, :HID].set(
        w2.astype(jnp.float32)[:, 0])
    b2s = b2.reshape(1).astype(jnp.float32)          # scalar bias -> SMEM

    tb = min(block_batch, B)                          # batch tile (rows)
    nb = pl.cdiv(B, tb)

    row_blk = lambda i: (i, 0)
    const2 = lambda i: (0, 0)

    in_specs = [
        pl.BlockSpec((tb, IN_DIM), row_blk),                  # x tile
        pl.BlockSpec((IN_DIM, HID_PAD), const2),              # w1 (resident)
        pl.BlockSpec((1, HID_PAD), const2),                   # b1 (resident)
        pl.BlockSpec((1, HID_PAD), const2),                   # w2 row (resident)
        pl.BlockSpec(memory_space=pltpu.MemorySpace.SMEM),    # b2 scalar
    ]
    args = [x, w1p, b1p, w2p, b2s]
    kernel = _disc_eval_kernel

    if training:
        # TODO(synk): RNG stream differs from torch.nn.Dropout (semantics
        # match: keep-prob 0.8 with 1/0.8 inverted scaling; exact mask bits
        # do not).
        rbits = jax.random.bits(rng_key, (B, HID_PAD), jnp.uint32)
        in_specs.append(pl.BlockSpec((tb, HID_PAD), row_blk))  # per-tile mask bits
        args.append(rbits)
        kernel = _disc_train_kernel

    logits = pl.pallas_call(
        kernel,
        out_shape=jax.ShapeDtypeStruct((B, OUT), jnp.float32),
        grid_spec=pltpu.PrefetchScalarGridSpec(
            num_scalar_prefetch=0,
            grid=(nb,),
            in_specs=in_specs,
            out_specs=pl.BlockSpec((tb, OUT), row_blk)),
        compiler_params=pltpu.CompilerParams(
            dimension_semantics=("parallel",)),
    )(*args)
    return logits


def init_params(key):
    """Torch nn.Linear default init: U(-1/sqrt(fan_in), 1/sqrt(fan_in))."""
    k1, k2, k3, k4 = jax.random.split(key, 4)
    bound1 = 1.0 / jnp.sqrt(IN_DIM)
    bound2 = 1.0 / jnp.sqrt(HID)
    w1 = jax.random.uniform(k1, (IN_DIM, HID), jnp.float32, -bound1, bound1)
    b1 = jax.random.uniform(k2, (HID,), jnp.float32, -bound1, bound1)
    w2 = jax.random.uniform(k3, (HID, OUT), jnp.float32, -bound2, bound2)
    b2 = jax.random.uniform(k4, (OUT,), jnp.float32, -bound2, bound2)
    return w1, b1, w2, b2


if __name__ == "__main__":
    key = jax.random.PRNGKey(0)
    pkey, xkey, dkey = jax.random.split(key, 3)

    w1, b1, w2, b2 = init_params(pkey)

    # Small batch of MNIST-shaped images, NCHW.
    B = 8
    imgs = jax.random.normal(xkey, (B, 1, 28, 28), jnp.float32)

    # Eval-mode forward (dropout = identity) — deterministic hot path.
    logits = discriminator_forward(imgs, w1, b1, w2, b2, dkey, training=False)
    logits = jax.block_until_ready(logits)
    assert logits.shape == (B, OUT)

    # Pure-JAX reference (eval mode) using the same bf16-rounded matmul
    # operands as the kernel, accumulated in f32.
    xb = imgs.reshape(B, -1).astype(jnp.bfloat16).astype(jnp.float32)
    w1b = w1.astype(jnp.bfloat16).astype(jnp.float32)
    h = jnp.dot(xb, w1b, precision=jax.lax.Precision.HIGHEST) + b1
    h = jnp.where(h > 0, h, NEG_SLOPE * h)
    ref = jnp.dot(h, w2, precision=jax.lax.Precision.HIGHEST) + b2
    assert jnp.allclose(logits, ref, atol=2e-3, rtol=2e-3), (
        float(jnp.max(jnp.abs(logits - ref))))

    # Exercise the training (dropout) path once.
    logits_train = discriminator_forward(imgs, w1, b1, w2, b2, dkey,
                                         training=True)
    logits_train = jax.block_until_ready(logits_train)
    assert logits_train.shape == (B, OUT)

    print("KERNEL_OK")
</pallas_src>

<mosaic_0001>
module attributes {stable_mosaic.version = 11 : i64} {
  func.func @_disc_eval_kernel(%arg0: i32, %arg1: memref<8x784xbf16, #tpu.memory_space<vmem>>, %arg2: memref<784x256xbf16, #tpu.memory_space<vmem>>, %arg3: memref<1x256xf32, #tpu.memory_space<vmem>>, %arg4: memref<1x256xf32, #tpu.memory_space<vmem>>, %arg5: memref<1xf32, #tpu.memory_space<smem>>, %arg6: memref<8x1xf32, #tpu.memory_space<vmem>>) attributes {dimension_semantics = [#tpu.dimension_semantics<parallel>], iteration_bounds = array<i64: 1>, scalar_prefetch = 0 : i64, scratch_operands = 0 : i64, tpu.core_type = #tpu.core_type<tc>, window_params = [{transform_indices = @transform_0, window_bounds = array<i64: 8, 784>}, {pipeline_mode = #tpu.pipeline_mode<synchronous>, transform_indices = @transform_1, window_bounds = array<i64: 784, 256>}, {pipeline_mode = #tpu.pipeline_mode<synchronous>, transform_indices = @transform_2, window_bounds = array<i64: 1, 256>}, {pipeline_mode = #tpu.pipeline_mode<synchronous>, transform_indices = @transform_3, window_bounds = array<i64: 1, 256>}, {transform_indices = @transform_4, window_bounds = array<i64: 1>}, {transform_indices = @transform_5, window_bounds = array<i64: 8, 1>}]} {
    %c0 = arith.constant 0 : index
    %c0_0 = arith.constant 0 : index
    %0 = vector.load %arg1[%c0, %c0_0] : memref<8x784xbf16, #tpu.memory_space<vmem>>, vector<8x784xbf16>
    %c0_1 = arith.constant 0 : index
    %c0_2 = arith.constant 0 : index
    %1 = vector.load %arg2[%c0_1, %c0_2] : memref<784x256xbf16, #tpu.memory_space<vmem>>, vector<784x256xbf16>
    %cst = arith.constant dense<0.000000e+00> : vector<8x256xf32>
    %2 = tpu.matmul %0, %1, %cst {dimension_numbers = #tpu.dot_dimension_numbers<[1], [0], [0], [1], [0, 0, 1, 1], [], []>} : vector<8x784xbf16>, vector<784x256xbf16>, vector<8x256xf32> -> vector<8x256xf32>
    %c0_3 = arith.constant 0 : index
    %c0_4 = arith.constant 0 : index
    %3 = vector.load %arg3[%c0_3, %c0_4] : memref<1x256xf32, #tpu.memory_space<vmem>>, vector<1x256xf32>
    %4 = vector.broadcast %3 : vector<1x256xf32> to vector<8x256xf32>
    %5 = arith.addf %2, %4 : vector<8x256xf32>
    %cst_5 = arith.constant 0.000000e+00 : f32
    %6 = vector.broadcast %cst_5 : f32 to vector<8x256xf32>
    %7 = arith.cmpf ogt, %5, %6 : vector<8x256xf32>
    %cst_6 = arith.constant 0.00999999977 : f32
    %8 = vector.broadcast %cst_6 : f32 to vector<8x256xf32>
    %9 = arith.mulf %8, %5 : vector<8x256xf32>
    %10 = arith.select %7, %5, %9 : vector<8x256xi1>, vector<8x256xf32>
    %c0_7 = arith.constant 0 : index
    %c0_8 = arith.constant 0 : index
    %11 = vector.load %arg4[%c0_7, %c0_8] : memref<1x256xf32, #tpu.memory_space<vmem>>, vector<1x256xf32>
    %12 = vector.broadcast %11 : vector<1x256xf32> to vector<8x256xf32>
    %13 = arith.mulf %10, %12 : vector<8x256xf32>
    %cst_9 = arith.constant dense<0.000000e+00> : vector<8xf32>
    %14 = vector.multi_reduction <add>, %13, %cst_9 [1] : vector<8x256xf32> to vector<8xf32>
    %15 = vector.shape_cast %14 : vector<8xf32> to vector<8x1xf32>
    %c0_10 = arith.constant 0 : index
    %16 = memref.load %arg5[%c0_10] : memref<1xf32, #tpu.memory_space<smem>>
    %17 = vector.broadcast %16 : f32 to vector<8x1xf32>
    %18 = arith.addf %15, %17 : vector<8x1xf32>
    %c0_11 = arith.constant 0 : index
    %c0_12 = arith.constant 0 : index
    %19 = vector.load %arg6[%c0_11, %c0_12] : memref<8x1xf32, #tpu.memory_space<vmem>>, vector<8x1xf32>
    tpu.vector_store %arg6[%c0_11, %c0_12], %18 {strides = array<i32>} : memref<8x1xf32, #tpu.memory_space<vmem>>, vector<8x1xf32>,
    return
  }
  func.func @transform_0(%arg0: i32) -> (i32, i32) {
    %c0_i32 = arith.constant 0 : i32
    %c0_i32_0 = arith.constant 0 : i32
    return %arg0, %c0_i32 : i32, i32
  }
  func.func @transform_1(%arg0: i32) -> (i32, i32) {
    %c0_i32 = arith.constant 0 : i32
    %c0_i32_0 = arith.constant 0 : i32
    %c0_i32_1 = arith.constant 0 : i32
    return %c0_i32, %c0_i32_0 : i32, i32
  }
  func.func @transform_2(%arg0: i32) -> (i32, i32) {
    %c0_i32 = arith.constant 0 : i32
    %c0_i32_0 = arith.constant 0 : i32
    %c0_i32_1 = arith.constant 0 : i32
    return %c0_i32, %c0_i32_0 : i32, i32
  }
  func.func @transform_3(%arg0: i32) -> (i32, i32) {
    %c0_i32 = arith.constant 0 : i32
    %c0_i32_0 = arith.constant 0 : i32
    %c0_i32_1 = arith.constant 0 : i32
    return %c0_i32, %c0_i32_0 : i32, i32
  }
  func.func @transform_4(%arg0: i32) -> i32 {
    %c0_i32 = arith.constant 0 : i32
    %c0_i32_0 = arith.constant 0 : i32
    return %c0_i32 : i32
  }
  func.func @transform_5(%arg0: i32) -> (i32, i32) {
    %c0_i32 = arith.constant 0 : i32
    %c0_i32_0 = arith.constant 0 : i32
    return %arg0, %c0_i32 : i32, i32
  }
}

</mosaic_0001>

<bundles_post_ra>
// kernel: discriminator_forward.1
= control target key start
LH: loop header
LB: loop body
LE: loop exit
PB: predicated region body
PF: predicated region fallthrough
CT: control target
= control target key end

     0   :  { %vm650_vm0 = vcmask 130048   ;;  %vm844_vm3 = vcmask 7168   ;;  %s1484_s1 = inlined_call_operand.vmem [shape: bf16[784,256], index: 1, kind: input, shape index: {}]   ;;  %s1485_s0 = inlined_call_operand.vmem [shape: bf16[8,784], index: 0, kind: input, shape index: {}]   ;;  %s1486_s2 = inlined_call_operand.vmem [shape: f32[1,256], index: 2, kind: input, shape index: {}]   ;;  %s1487_s3 = inlined_call_operand.vmem [shape: f32[1,256], index: 3, kind: input, shape index: {}]   ;;  %s1488_s4 = inlined_call_operand.<no memory space> [shape: f32[1], index: 4, kind: input, shape index: {}]   ;;  %s1489_s5 = inlined_call_operand.vmem [shape: f32[8,1], index: 5, kind: output, shape index: {}]  }
   0x1   :  { %v969_v0 = vld [vmem:[%s1484_s1 + $0x4] ss:$8 sps:$4 sm:$0xff]   ;;  %v971_v1 = vld [vmem:[%s1484_s1] ss:$8 sps:$4 sm:$0xff]   ;;  %v972_v2 = vld [vmem:[%s1484_s1 + $0x14] ss:$8 sps:$4 sm:$0xff]  }
   0x2   :  { %654 = vmatprep.subr.bf16.mxu1 %v969_v0  ;;  %v974_v3 = vld [vmem:[%s1484_s1 + $0x10] ss:$8 sps:$4 sm:$0xff]   ;;  %v975_v4 = vld [vmem:[%s1484_s1 + $0x24] ss:$8 sps:$4 sm:$0xff]   ;;  %v977_v5 = vld [vmem:[%s1484_s1 + $0x20] ss:$8 sps:$4 sm:$0xff]  }
   0x3   :  { %655 = vmatpush1.bf16.msra.mxu1 %v971_v1  ;;  %v978_v6 = vld [vmem:[%s1484_s1 + $0x34] ss:$8 sps:$4 sm:$0xff]   ;;  %v980_v7 = vld [vmem:[%s1484_s1 + $0x30] ss:$8 sps:$4 sm:$0xff]   ;;  %v981_v8 = vld [vmem:[%s1484_s1 + $0x44] ss:$8 sps:$4 sm:$0xff]  }
   0x4   :  { %656 = vmatprep.subr.bf16.mxu1 %v972_v2  ;;  %v999_v9 = vld [vmem:[%s1484_s1 + $0x204] ss:$8 sps:$4 sm:$0xff]   ;;  %v983_v10 = vld [vmem:[%s1484_s1 + $0x40] ss:$8 sps:$4 sm:$0xff]   ;;  %v984_v11 = vld [vmem:[%s1484_s1 + $0x54] ss:$8 sps:$4 sm:$0xff]  }
   0x5   :  { %v1003_v12 = vld [vmem:[%s1484_s1 + $0x200] ss:$8 sps:$4 sm:$0xff]   ;;  %736 = vmatprep.subr.bf16.mxu0 %v999_v9  ;;  %v1005_v13 = vld [vmem:[%s1484_s1 + $0x214] ss:$8 sps:$4 sm:$0xff]   ;;  %v986_v14 = vld [vmem:[%s1484_s1 + $0x50] ss:$8 sps:$4 sm:$0xff]  }
   0x6   :  { %737 = vmatpush1.bf16.msra.mxu0 %v1003_v12  ;;  %v1009_v15 = vld [vmem:[%s1484_s1 + $0x210] ss:$8 sps:$4 sm:$0xff]   ;;  %v1011_v16 = vld [vmem:[%s1484_s1 + $0x224] ss:$8 sps:$4 sm:$0xff]   ;;  %v1015_v18 = vld [vmem:[%s1484_s1 + $0x220] ss:$8 sps:$4 sm:$0xff]  }
   0x7   :  { %657 = vmatpush1.bf16.msra.mxu1 %v974_v3  ;;  %738 = vmatprep.subr.bf16.mxu0 %v1005_v13  ;;  %v987_v17 = vld [vmem:[%s1484_s1 + $0x64] ss:$8 sps:$4 sm:$0xff]   ;;  %v1017_v19 = vld [vmem:[%s1484_s1 + $0x234] ss:$8 sps:$4 sm:$0xff]   ;;  %v989_v20 = vld [vmem:[%s1484_s1 + $0x60] ss:$8 sps:$4 sm:$0xff]  }
   0x8   :  { %658 = vmatprep.subr.bf16.mxu1 %v975_v4  ;;  %v990_v21 = vld [vmem:[%s1484_s1 + $0x74] ss:$8 sps:$4 sm:$0xff]   ;;  %v1021_v22 = vld [vmem:[%s1484_s1 + $0x230] ss:$8 sps:$4 sm:$0xff]   ;;  %v1023_v23 = vld [vmem:[%s1484_s1 + $0x244] ss:$8 sps:$4 sm:$0xff]  }
   0x9   :  { %v992_v24 = vld [vmem:[%s1484_s1 + $0x70] ss:$8 sps:$4 sm:$0xff]   ;;  %v993_v25 = vld [vmem:[%s1484_s1 + $0x84] ss:$8 sps:$4 sm:$0xff]   ;;  %v1027_v26 = vld [vmem:[%s1484_s1 + $0x240] ss:$8 sps:$4 sm:$0xff]  }
   0xa   :  { %739 = vmatpush1.bf16.msra.mxu0 %v1009_v15  ;;  %v1029_v27 = vld [vmem:[%s1484_s1 + $0x254] ss:$8 sps:$4 sm:$0xff]   ;;  %v1241_v28 = vld [vmem:[%s1485_s0] sm:$0xff]  ;;  %v1033_v32 = vld [vmem:[%s1484_s1 + $0x250] ss:$8 sps:$4 sm:$0xff]  }
   0xb   :  { %659 = vmatpush1.bf16.msra.mxu1 %v977_v5  ;;  %740 = vmatprep.subr.bf16.mxu0 %v1011_v16  ;;  %v995_v29 = vld [vmem:[%s1484_s1 + $0x80] ss:$8 sps:$4 sm:$0xff]   ;;  %v851_v30 = vcombine.high %v1241_v28, %v1241_v28  ;;  %v996_v31 = vld [vmem:[%s1484_s1 + $0x94] ss:$8 sps:$4 sm:$0xff]   ;;  %v1035_v33 = vld [vmem:[%s1484_s1 + $0x264] ss:$8 sps:$4 sm:$0xff]   ;;  %v850_v63 = vcombine.low %v1241_v28, %v1241_v28 }
   0xc   :  { %660 = vmatprep.subr.bf16.mxu1 %v978_v6  ;;  %v998_v34 = vld [vmem:[%s1484_s1 + $0x90] ss:$8 sps:$4 sm:$0xff]   ;;  %v1001_v35 = vld [vmem:[%s1484_s1 + $0xa4] ss:$8 sps:$4 sm:$0xff]   ;;  %v1043_v36 = vld [vmem:[%s1484_s1 + $0x260] ss:$8 sps:$4 sm:$0xff]  }
   0xd   :  { %686 = vmatprep.mubr.bf16.mxu1 %v851_v30  ;;  %v1044_v37 = vld [vmem:[%s1484_s1 + $0x274] ss:$8 sps:$4 sm:$0xff]   ;;  %v1004_v38 = vld [vmem:[%s1484_s1 + $0xa0] ss:$8 sps:$4 sm:$0xff]   ;;  %v1049_v40 = vld [vmem:[%s1484_s1 + $0x270] ss:$8 sps:$4 sm:$0xff]  }
   0xe   :  { %741 = vmatpush1.bf16.msra.mxu0 %v1015_v18  ;;  %v1007_v39 = vld [vmem:[%s1484_s1 + $0xb4] ss:$8 sps:$4 sm:$0xff]   ;;  %v1050_v41 = vld [vmem:[%s1484_s1 + $0x284] ss:$8 sps:$4 sm:$0xff]   ;;  %v1010_v42 = vld [vmem:[%s1484_s1 + $0xb0] ss:$8 sps:$4 sm:$0xff]  }
   0xf   :  { %661 = vmatpush1.bf16.msra.mxu1 %v980_v7  ;;  %742 = vmatprep.subr.bf16.mxu0 %v1017_v19  ;;  %v1013_v43 = vld [vmem:[%s1484_s1 + $0xc4] ss:$8 sps:$4 sm:$0xff]   ;;  %v1055_v44 = vld [vmem:[%s1484_s1 + $0x280] ss:$8 sps:$4 sm:$0xff]   ;;  %v1056_v45 = vld [vmem:[%s1484_s1 + $0x294] ss:$8 sps:$4 sm:$0xff]  }
  0x10   :  { %662 = vmatprep.subr.bf16.mxu1 %v981_v8  ;;  %v1016_v46 = vld [vmem:[%s1484_s1 + $0xc0] ss:$8 sps:$4 sm:$0xff]   ;;  %v1019_v47 = vld [vmem:[%s1484_s1 + $0xd4] ss:$8 sps:$4 sm:$0xff]   ;;  %v1061_v48 = vld [vmem:[%s1484_s1 + $0x290] ss:$8 sps:$4 sm:$0xff]  }
  0x11   :  { %v1062_v49 = vld [vmem:[%s1484_s1 + $0x2a4] ss:$8 sps:$4 sm:$0xff]   ;;  %v1022_v50 = vld [vmem:[%s1484_s1 + $0xd0] ss:$8 sps:$4 sm:$0xff]   ;;  %v1067_v52 = vld [vmem:[%s1484_s1 + $0x2a0] ss:$8 sps:$4 sm:$0xff]  }
  0x12   :  { %743 = vmatpush1.bf16.msra.mxu0 %v1021_v22  ;;  %v1025_v51 = vld [vmem:[%s1484_s1 + $0xe4] ss:$8 sps:$4 sm:$0xff]   ;;  %v1068_v53 = vld [vmem:[%s1484_s1 + $0x2b4] ss:$8 sps:$4 sm:$0xff]   ;;  %v1028_v54 = vld [vmem:[%s1484_s1 + $0xe0] ss:$8 sps:$4 sm:$0xff]  }
  0x13   :  { %663 = vmatpush1.bf16.msra.mxu1 %v983_v10  ;;  %744 = vmatprep.subr.bf16.mxu0 %v1023_v23  ;;  %v1031_v55 = vld [vmem:[%s1484_s1 + $0xf4] ss:$8 sps:$4 sm:$0xff]   ;;  %v1073_v56 = vld [vmem:[%s1484_s1 + $0x2b0] ss:$8 sps:$4 sm:$0xff]   ;;  %v1074_v58 = vld [vmem:[%s1484_s1 + $0x2c4] ss:$8 sps:$4 sm:$0xff]  }
  0x14   :  { %664 = vmatprep.subr.bf16.mxu1 %v984_v11  ;;  %v24_v57 = vld [vmem:[%s1485_s0 + $0x10] sm:$0xff]  ;;  %v1042_v61 = vld [vmem:[%s1484_s1 + $0x104] ss:$8 sps:$4 sm:$0xff]   ;;  %v1079_v62 = vld [vmem:[%s1484_s1 + $0x2c0] ss:$8 sps:$4 sm:$0xff]  }
  0x15   :  { %v855_v59 = vcombine.high %v24_v57, %v24_v57  ;;  %v1034_v60 = vld [vmem:[%s1484_s1 + $0xf0] ss:$8 sps:$4 sm:$0xff]   ;;  %v1080_v0 = vld [vmem:[%s1484_s1 + $0x2d4] ss:$8 sps:$4 sm:$0xff]   ;;  %v1040_v1 = vld [vmem:[%s1484_s1 + $0x100] ss:$8 sps:$4 sm:$0xff]  }
  0x16   :  { %745 = vmatpush1.bf16.msra.mxu0 %v1027_v26  ;;  %v1048_v2 = vld [vmem:[%s1484_s1 + $0x114] ss:$8 sps:$4 sm:$0xff]   ;;  %v1085_v3 = vld [vmem:[%s1484_s1 + $0x2d0] ss:$8 sps:$4 sm:$0xff]   ;;  %v1086_v4 = vld [vmem:[%s1484_s1 + $0x2e4] ss:$8 sps:$4 sm:$0xff]  }
  0x17   :  { %665 = vmatpush1.bf16.msra.mxu1 %v986_v14  ;;  %746 = vmatprep.subr.bf16.mxu0 %v1029_v27  ;;  %v1361_v5 = vld [vmem:[%s1485_s0 + $0x8] sm:$0xff]  ;;  %v1046_v6 = vld [vmem:[%s1484_s1 + $0x110] ss:$8 sps:$4 sm:$0xff]   ;;  %v1092_v10 = vld [vmem:[%s1484_s1 + $0x2f4] ss:$8 sps:$4 sm:$0xff]  }
  0x18   :  { %666 = vmatprep.subr.bf16.mxu1 %v987_v17  ;;  %768 = vmatprep.mubr.bf16.mxu0 %v855_v59  ;;  %v853_v7 = vcombine.high %v1361_v5, %v1361_v5  ;;  %v1054_v8 = vld [vmem:[%s1484_s1 + $0x124] ss:$8 sps:$4 sm:$0xff]   ;;  %v1091_v9 = vld [vmem:[%s1484_s1 + $0x2e0] ss:$8 sps:$4 sm:$0xff]   ;;  %v1060_v12 = vld [vmem:[%s1484_s1 + $0x134] ss:$8 sps:$4 sm:$0xff]   ;;  %v854_v17 = vcombine.low %v24_v57, %v24_v57 }
  0x19   :  { %v1052_v11 = vld [vmem:[%s1484_s1 + $0x120] ss:$8 sps:$4 sm:$0xff]   ;;  %v1097_v13 = vld [vmem:[%s1484_s1 + $0x2f0] ss:$8 sps:$4 sm:$0xff]   ;;  %v1108_v14 = vld [vmem:[%s1484_s1 + $0x304] ss:$8 sps:$4 sm:$0xff]  }
  0x1a   :  { %747 = vmatpush1.bf16.msra.mxu0 %v1033_v32  ;;  %v1058_v15 = vld [vmem:[%s1484_s1 + $0x130] ss:$8 sps:$4 sm:$0xff]   ;;  %v1066_v16 = vld [vmem:[%s1484_s1 + $0x144] ss:$8 sps:$4 sm:$0xff]   ;;  %v1106_v18 = vld [vmem:[%s1484_s1 + $0x300] ss:$8 sps:$4 sm:$0xff]  }
  0x1b   :  { %667 = vmatpush1.bf16.msra.mxu1 %v989_v20  ;;  %748 = vmatprep.subr.bf16.mxu0 %v1035_v33  ;;  %v1064_v19 = vld [vmem:[%s1484_s1 + $0x140] ss:$8 sps:$4 sm:$0xff]   ;;  %v1072_v20 = vld [vmem:[%s1484_s1 + $0x154] ss:$8 sps:$4 sm:$0xff]   ;;  %v1070_v22 = vld [vmem:[%s1484_s1 + $0x150] ss:$8 sps:$4 sm:$0xff]  }
  0x1c   :  { %668 = vmatprep.subr.bf16.mxu1 %v990_v21  ;;  %v1123_v21 = vmov 0   ;;  %v1078_v23 = vld [vmem:[%s1484_s1 + $0x164] ss:$8 sps:$4 sm:$0xff]   ;;  %v1084_v26 = vld [vmem:[%s1484_s1 + $0x174] ss:$8 sps:$4 sm:$0xff]  }
  0x1d   :  { %v1082_v27 = vld [vmem:[%s1484_s1 + $0x170] ss:$8 sps:$4 sm:$0xff]   ;;  %v1090_v28 = vld [vmem:[%s1484_s1 + $0x184] ss:$8 sps:$4 sm:$0xff]   ;;  %v1096_v30 = vld [vmem:[%s1484_s1 + $0x194] ss:$8 sps:$4 sm:$0xff]  }
  0x1e   :  { %749 = vmatpush1.bf16.msra.mxu0 %v1043_v36  ;;  %v1102_v32 = vld [vmem:[%s1484_s1 + $0x1a4] ss:$8 sps:$4 sm:$0xff]   ;;  %v1100_v33 = vld [vmem:[%s1484_s1 + $0x1a0] ss:$8 sps:$4 sm:$0xff]  }
  0x1f   :  { %669 = vmatpush1.bf16.msra.mxu1 %v992_v24  ;;  %750 = vmatprep.subr.bf16.mxu0 %v1044_v37  ;;  %v1076_v24 = vld [vmem:[%s1484_s1 + $0x160] ss:$8 sps:$4 sm:$0xff]   ;;  %v1111_v36 = vld [vmem:[%s1484_s1 + $0x1c4] ss:$8 sps:$4 sm:$0xff]  }
  0x20   :  { %670 = vmatprep.subr.bf16.mxu1 %v993_v25  ;;  %v1039_v25 = vld [vmem:[%s1485_s0 + $0x18] ss:$0 sps:$4 sm:$0xff]   ;;  %v1109_v37 = vld [vmem:[%s1484_s1 + $0x1c0] ss:$8 sps:$4 sm:$0xff]  }
  0x21   :  { %v824_v59 = vld [vmem:[%s1487_s3] sm:$0x3] }
  0x22   :  { %751 = vmatpush1.bf16.msra.mxu0 %v1049_v40  ;;  %v1117_v40 = vld [vmem:[%s1484_s1 + $0x1e4] ss:$8 sps:$4 sm:$0xff]  }
  0x23   :  { %671 = vmatpush1.bf16.msra.mxu1 %v995_v29  ;;  %752 = vmatprep.subr.bf16.mxu0 %v1050_v41  ;;  %v1088_v29 = vld [vmem:[%s1484_s1 + $0x180] ss:$8 sps:$4 sm:$0xff]  }
  0x24   :  { %672 = vmatprep.subr.bf16.mxu1 %v996_v31  ;;  %v1094_v31 = vld [vmem:[%s1484_s1 + $0x190] ss:$8 sps:$4 sm:$0xff]   ;;  %v1115_v41 = vld [vmem:[%s1484_s1 + $0x1e0] ss:$8 sps:$4 sm:$0xff]  }
  0x26   :  { %753 = vmatpush1.bf16.msra.mxu0 %v1055_v44  ;;  %v852_v44 = vcombine.low %v1361_v5, %v1361_v5 }
  0x27   :  { %673 = vmatpush1.bf16.msra.mxu1 %v998_v34  ;;  %754 = vmatprep.subr.bf16.mxu0 %v1056_v45  ;;  %v1105_v34 = vld [vmem:[%s1484_s1 + $0x1b4] ss:$8 sps:$4 sm:$0xff]  }
  0x28   :  { %674 = vmatprep.subr.bf16.mxu1 %v1001_v35  ;;  %v1103_v35 = vld [vmem:[%s1484_s1 + $0x1b0] ss:$8 sps:$4 sm:$0xff]  }
  0x2a   :  { %755 = vmatpush1.bf16.msra.mxu0 %v1061_v48 }
  0x2b   :  { %675 = vmatpush1.bf16.msra.mxu1 %v1004_v38  ;;  %756 = vmatprep.subr.bf16.mxu0 %v1062_v49  ;;  %v1114_v38 = vld [vmem:[%s1484_s1 + $0x1d4] ss:$8 sps:$4 sm:$0xff]   ;;  %v126_v49 = vlaneseq }
  0x2c   :  { %676 = vmatprep.subr.bf16.mxu1 %v1007_v39  ;;  %v1112_v39 = vld [vmem:[%s1484_s1 + $0x1d0] ss:$8 sps:$4 sm:$0xff]  }
  0x2e   :  { %757 = vmatpush1.bf16.msra.mxu0 %v1067_v52  ;;  %v124_v52 = vld [vmem:[%s1486_s2] sm:$0x3] }
  0x2f   :  { %677 = vmatpush1.bf16.msra.mxu1 %v1010_v42  ;;  %758 = vmatprep.subr.bf16.mxu0 %v1068_v53  ;;  %v1120_v42 = vld [vmem:[%s1484_s1 + $0x1f4] ss:$8 sps:$4 sm:$0xff]  }
  0x30   :  { %678 = vmatprep.subr.bf16.mxu1 %v1013_v43  ;;  %v1118_v43 = vld [vmem:[%s1484_s1 + $0x1f0] ss:$8 sps:$4 sm:$0xff]  }
  0x32   :  { %759 = vmatpush1.bf16.msra.mxu0 %v1073_v56 }
  0x33   :  { %679 = vmatpush1.bf16.msra.mxu1 %v1016_v46  ;;  %760 = vmatprep.subr.bf16.mxu0 %v1074_v58 }
  0x34   :  { %680 = vmatprep.subr.bf16.mxu1 %v1019_v47 }
  0x36   :  { %761 = vmatpush1.bf16.msra.mxu0 %v1079_v62 }
  0x37   :  { %681 = vmatpush1.bf16.msra.mxu1 %v1022_v50  ;;  %762 = vmatprep.subr.bf16.mxu0 %v1080_v0  ;;  %v127_v50 = vshrl.u32 %v126_v49, 7 }
  0x38   :  { %682 = vmatprep.subr.bf16.mxu1 %v1025_v51 }
  0x39   :  { %v128_v51 = vsub.s32 0, %v127_v50  ;;  %v132_v53 = vsub.s32 1, %v127_v50 }
  0x3a   :  { %763 = vmatpush1.bf16.msra.mxu0 %v1085_v3 }
  0x3b   :  { %683 = vmatpush1.bf16.msra.mxu1 %v1028_v54  ;;  %764 = vmatprep.subr.bf16.mxu0 %v1086_v4  ;;  %v129_v54 = vrot.slane %v124_v52, %v128_v51  ;;  %v833_v3 = vrot.slane %v824_v59, %v132_v53 }
  0x3c   :  { %684 = vmatprep.subr.bf16.mxu1 %v1031_v55  ;;  %v133_v55 = vrot.slane %v124_v52, %v132_v53 }
  0x3e   :  { %765 = vmatpush1.bf16.msra.mxu0 %v1091_v9 }
  0x3f   :  { %685 = vmatpush1.bf16.msra.mxu1 %v1034_v60  ;;  %766 = vmatprep.subr.bf16.mxu0 %v1092_v10  ;;  %v842_v10 = vstv %s1488_s4 }
  0x40   :  { %695 = vmatprep.subr.bf16.mxu1 %v1042_v61 }
  0x42   :  { %687 = vmatmul.mubr.bf16.vlgmr.msra.gmra.mrb[0].mxu1 %v850_v63  ;;  %767 = vmatpush1.bf16.msra.mxu0 %v1097_v13 }
  0x43   :  { %696 = vmatpush1.bf16.msra.mxu1 %v1040_v1  ;;  %727 = vmatprep.mubr.bf16.mxu1 %v853_v7  ;;  %v829_v1 = vrot.slane %v824_v59, %v128_v51 }
  0x44   :  { %697 = vmatprep.subr.bf16.mxu1 %v1048_v2  ;;  %777 = vmatprep.subr.bf16.mxu0 %v1108_v14 }
  0x45   :  { %769 = vmatmul.mubr.bf16.vlgmr.msra.gmra.mrb[0].mxu0 %v854_v17 }
  0x46   :  { %778 = vmatpush1.bf16.msra.mxu0 %v1106_v18  ;;  %809 = vmatprep.mubr.bf16.mxu0 %v1123_v21 }
  0x47   :  { %698 = vmatpush1.bf16.msra.mxu1 %v1046_v6 }
  0x48   :  { %699 = vmatprep.subr.bf16.mxu1 %v1054_v8 }
  0x4b   :  { %700 = vmatpush1.bf16.msra.mxu1 %v1052_v11 }
  0x4c   :  { %701 = vmatprep.subr.bf16.mxu1 %v1060_v12 }
  0x4f   :  { %702 = vmatpush1.bf16.msra.mxu1 %v1058_v15 }
  0x50   :  { %703 = vmatprep.subr.bf16.mxu1 %v1066_v16 }
  0x51   :  { %955 = vmatmul.mubr.msk.bf16.vlgmr.msra.gmra.mrb[0].mxu0 %vm650_vm0, %v1039_v25 }
  0x53   :  { %704 = vmatpush1.bf16.msra.mxu1 %v1064_v19 }
  0x54   :  { %705 = vmatprep.subr.bf16.mxu1 %v1072_v20 }
  0x57   :  { %706 = vmatpush1.bf16.msra.mxu1 %v1070_v22 }
  0x58   :  { %707 = vmatprep.subr.bf16.mxu1 %v1078_v23 }
  0x5b   :  { %708 = vmatpush1.bf16.msra.mxu1 %v1076_v24 }
  0x5c   :  { %709 = vmatprep.subr.bf16.mxu1 %v1084_v26 }
  0x5f   :  { %710 = vmatpush1.bf16.msra.mxu1 %v1082_v27 }
  0x60   :  { %711 = vmatprep.subr.bf16.mxu1 %v1090_v28 }
  0x63   :  { %712 = vmatpush1.bf16.msra.mxu1 %v1088_v29 }
  0x64   :  { %713 = vmatprep.subr.bf16.mxu1 %v1096_v30 }
  0x67   :  { %714 = vmatpush1.bf16.msra.mxu1 %v1094_v31 }
  0x68   :  { %715 = vmatprep.subr.bf16.mxu1 %v1102_v32 }
  0x6b   :  { %716 = vmatpush1.bf16.msra.mxu1 %v1100_v33 }
  0x6c   :  { %717 = vmatprep.subr.bf16.mxu1 %v1105_v34 }
  0x6f   :  { %718 = vmatpush1.bf16.msra.mxu1 %v1103_v35 }
  0x70   :  { %719 = vmatprep.subr.bf16.mxu1 %v1111_v36 }
  0x73   :  { %720 = vmatpush1.bf16.msra.mxu1 %v1109_v37 }
  0x74   :  { %721 = vmatprep.subr.bf16.mxu1 %v1114_v38 }
  0x77   :  { %722 = vmatpush1.bf16.msra.mxu1 %v1112_v39 }
  0x78   :  { %723 = vmatprep.subr.bf16.mxu1 %v1117_v40 }
  0x7b   :  { %724 = vmatpush1.bf16.msra.mxu1 %v1115_v41 }
  0x7c   :  { %725 = vmatprep.subr.bf16.mxu1 %v1120_v42 }
  0x7f   :  { %726 = vmatpush1.bf16.msra.mxu1 %v1118_v43 }
  0x82   :  { %728 = vmatmul.mubr.bf16.vlgmr.msra.gmra.mrb[0].mxu1 %v852_v44 }
 0x124   :  { %v811_v45 = vpop.f32.mrb[0].mxu0 }
 0x125   :  { %v813_v46 = vpop.f32.mrb[1].mxu0 }
 0x126   :  { %v815_v47 = vpop.f32.mrb[2].mxu0 }
 0x127   :  { %v816_v48 = vpop.f32.mrb[3].mxu0 }
 0x155   :  { %v729_v56 = vpop.f32.mrb[0].mxu1 }
 0x156   :  { %v956_v57 = vadd.f32 %v729_v56, %v129_v54  ;;  %v731_v58 = vpop.f32.mrb[1].mxu1 }
 0x157   :  { %v958_v60 = vadd.f32 %v731_v58, %v133_v55  ;;  %v733_v61 = vpop.f32.mrb[2].mxu1 }
 0x158   :  { %v957_v62 = vadd.f32 %v956_v57, %v811_v45  ;;  %v734_v63 = vpop.f32.mrb[3].mxu1 }
 0x159   :  { %v959_v0 = vadd.f32 %v958_v60, %v813_v46 }
 0x15a   :  { %v820_v2 = vmul.f32 0.01, %v957_v62  ;;  %vm818_vm1 = vcmp.gt.f32.partialorder %v957_v62, 0.0 }
 0x15b   :  { %v821_v4 = vmul.f32 0.01, %v959_v0  ;;  %vm819_vm2 = vcmp.gt.f32.partialorder %v959_v0, 0.0 }
 0x15c   :  { %v822_v5 = vsel %vm818_vm1, %v957_v62, %v820_v2 }
 0x15d   :  { %v823_v6 = vsel %vm819_vm2, %v959_v0, %v821_v4  ;;  %v836_v7 = vmul.f32 %v829_v1, %v822_v5 }
 0x15e   :  { %v837_v8 = vmul.f32 %v833_v3, %v823_v6 }
 0x160   :  { %v838_v9 = vadd.f32 %v837_v8, %v836_v7 }
 0x162   :  { %839 = vadd.xlane.f32.xlu0 %v838_v9 }
 0x1ef   :  { %v840_v11 = vpop.xlane.xlu0 %839 }
 0x1f0   :  { %v843_v12 = vadd.f32 %v842_v10, %v840_v11 }
 0x1f2   :  { %845 = vst.msk [vmem:[%s1489_s5] sm:$0xff] %vm844_vm3, %v843_v12 }

</bundles_post_ra>
